<compile_context>
chip_gen: v5e
topology: v5e:2x2
jax: 0.10.0
libtpu: 0.0.40
codegen_flags: <defaults>
</compile_context>

<pallas_src>
import jax
import jax.numpy as jnp
from jax import lax
from jax.experimental import pallas as pl
from jax.experimental.pallas import tpu as pltpu

EPS = 1e-5  # nn.BatchNorm2d default
VMEM_LIMIT = 32 * 1024 * 1024  # fits v5e/v6e/v7x scoped limits with headroom


def _round_up(x, m):
    return ((x + m - 1) // m) * m


def _make_stats_kernel(inv_m):
    """Pass 1: streaming per-channel sum/sumsq -> folded BN scale/bias."""

    def stats_kernel(patches_ref, w_ref, gamma_ref, beta_ref,
                     scale_ref, bias_ref, sum_sc, sq_sc):
        i = pl.program_id(0)

        @pl.when(i == 0)
        def _():
            sum_sc[...] = jnp.zeros_like(sum_sc)
            sq_sc[...] = jnp.zeros_like(sq_sc)

        # conv-as-matmul on the MXU: bf16 inputs, f32 accumulation.
        y = jnp.dot(patches_ref[...], w_ref[...],
                    preferred_element_type=jnp.float32)
        # one-pass stats: E[y] and E[y^2] accumulators (XLU reduces).
        sum_sc[...] += jnp.sum(y, axis=0, keepdims=True)
        sq_sc[...] += jnp.sum(y * y, axis=0, keepdims=True)

        @pl.when(i == pl.num_programs(0) - 1)
        def _():
            mean = sum_sc[...] * inv_m
            var = jnp.maximum(sq_sc[...] * inv_m - mean * mean, 0.0)
            inv_std = lax.rsqrt(var + EPS)
            scale = gamma_ref[...] * inv_std
            scale_ref[...] = scale
            bias_ref[...] = beta_ref[...] - mean * scale

    return stats_kernel


def _normalize_kernel(patches_ref, w_ref, scale_ref, bias_ref, o_ref):
    """Pass 2: recompute tile matmul and apply folded BN (one FMA/elem)."""
    y = jnp.dot(patches_ref[...], w_ref[...],
                preferred_element_type=jnp.float32)
    o_ref[...] = (y * scale_ref[...] + bias_ref[...]).astype(o_ref.dtype)


def shortcut_forward(x, weight, gamma, beta, *, tile_m=1024):
    """x: (N, Cin, H, W) NCHW. weight: (Cout, Cin, 3, 3). Returns NCHW f32."""
    N, Cin, H, W = x.shape
    Cout = weight.shape[0]
    stride = 2
    Ho = (H + 2 - 3) // stride + 1
    Wo = (W + 2 - 3) // stride + 1
    M = N * Ho * Wo
    K = Cin * 9

    # --- glue: im2col (zero pad 1, 3x3 windows, stride 2) ---
    # TODO(synk): fuse the im2col into the kernel (DMA 9 shifted NHWC slabs per
    # M-tile with memory_space=pl.ANY) to avoid materializing the inflated
    # patch matrix in HBM.
    xp = jnp.pad(x, ((0, 0), (0, 0), (1, 1), (1, 1)))
    patches = jnp.stack(
        [xp[:, :, kh: kh + stride * Ho: stride, kw: kw + stride * Wo: stride]
         for kh in range(3) for kw in range(3)],
        axis=2)                                               # (N,Cin,9,Ho,Wo)
    patches = jnp.transpose(patches, (0, 3, 4, 1, 2)).reshape(M, K)
    w_mat = weight.reshape(Cout, K).T                         # (K, Cout)

    # --- lane/sublane padding for dense vregs and unmasked stores ---
    Kp = _round_up(max(K, 128), 128)
    Cp = _round_up(max(Cout, 128), 128)
    TILE_M = min(tile_m, _round_up(M, 8))
    Mp = _round_up(M, TILE_M)
    num_tiles = Mp // TILE_M

    patches_p = jnp.zeros((Mp, Kp), jnp.bfloat16).at[:M, :K].set(
        patches.astype(jnp.bfloat16))
    w_p = jnp.zeros((Kp, Cp), jnp.bfloat16).at[:K, :Cout].set(
        w_mat.astype(jnp.bfloat16))
    gamma_p = jnp.zeros((1, Cp), jnp.float32).at[0, :Cout].set(
        gamma.astype(jnp.float32))
    beta_p = jnp.zeros((1, Cp), jnp.float32).at[0, :Cout].set(
        beta.astype(jnp.float32))

    patch_spec = pl.BlockSpec((TILE_M, Kp), lambda i: (i, 0))
    w_spec = pl.BlockSpec((Kp, Cp), lambda i: (0, 0))
    vec_spec = pl.BlockSpec((1, Cp), lambda i: (0, 0))

    # --- pass 1: global per-channel statistics -> folded scale/bias ---
    stats_cost = pl.CostEstimate(
        flops=2 * Mp * Kp * Cp,
        transcendentals=Cp,
        bytes_accessed=Mp * Kp * 2 + Kp * Cp * 2 + 4 * Cp * 4)

    scale, bias = pl.pallas_call(
        _make_stats_kernel(1.0 / M),
        out_shape=(jax.ShapeDtypeStruct((1, Cp), jnp.float32),
                   jax.ShapeDtypeStruct((1, Cp), jnp.float32)),
        grid_spec=pltpu.PrefetchScalarGridSpec(
            num_scalar_prefetch=0,
            grid=(num_tiles,),
            in_specs=[patch_spec, w_spec, vec_spec, vec_spec],
            out_specs=(vec_spec, vec_spec),
            scratch_shapes=[pltpu.VMEM((1, Cp), jnp.float32),
                            pltpu.VMEM((1, Cp), jnp.float32)]),
        compiler_params=pltpu.CompilerParams(
            dimension_semantics=("arbitrary",),
            vmem_limit_bytes=VMEM_LIMIT),
        cost_estimate=stats_cost,
    )(patches_p, w_p, gamma_p, beta_p)

    # --- pass 2: normalize (independent M tiles -> "parallel" for megacore) ---
    norm_cost = pl.CostEstimate(
        flops=2 * Mp * Kp * Cp + 2 * Mp * Cp,
        transcendentals=0,
        bytes_accessed=Mp * Kp * 2 + Kp * Cp * 2 + 2 * Cp * 4 + Mp * Cp * 4)

    out_flat = pl.pallas_call(
        _normalize_kernel,
        out_shape=jax.ShapeDtypeStruct((Mp, Cp), jnp.float32),
        grid_spec=pltpu.PrefetchScalarGridSpec(
            num_scalar_prefetch=0,
            grid=(num_tiles,),
            in_specs=[patch_spec, w_spec, vec_spec, vec_spec],
            out_specs=pl.BlockSpec((TILE_M, Cp), lambda i: (i, 0))),
        compiler_params=pltpu.CompilerParams(
            dimension_semantics=("parallel",),
            vmem_limit_bytes=VMEM_LIMIT),
        cost_estimate=norm_cost,
    )(patches_p, w_p, scale, bias)

    # --- glue: strip padding, back to NCHW ---
    out = out_flat[:M, :Cout].reshape(N, Ho, Wo, Cout)
    return jnp.transpose(out, (0, 3, 1, 2))


def shortcut_reference(x, weight, gamma, beta):
    """Plain-JAX reference (f32 conv + batch-stat BN) for verification."""
    y = lax.conv_general_dilated(
        x.astype(jnp.float32),
        weight.astype(jnp.float32),
        window_strides=(2, 2),
        padding=((1, 1), (1, 1)),
        dimension_numbers=("NCHW", "OIHW", "NCHW"),
    )
    mean = jnp.mean(y, axis=(0, 2, 3), keepdims=True)
    var = jnp.mean((y - mean) ** 2, axis=(0, 2, 3), keepdims=True)
    yhat = (y - mean) * lax.rsqrt(var + EPS)
    return yhat * gamma.reshape(1, -1, 1, 1) + beta.reshape(1, -1, 1, 1)


if __name__ == "__main__":
    # Shortcut(in_planes=4, planes=8) on a (2, 4, 16, 16) input.
    N, Cin, H, W = 2, 4, 16, 16
    Cout = 8

    key = jax.random.PRNGKey(0)
    kx, kw, kg, kb = jax.random.split(key, 4)

    x = jax.random.normal(kx, (N, Cin, H, W), dtype=jnp.float32)
    conv_weight = jax.random.normal(kw, (Cout, Cin, 3, 3), dtype=jnp.float32) * 0.1
    bn_gamma = 1.0 + 0.1 * jax.random.normal(kg, (Cout,), dtype=jnp.float32)
    bn_beta = 0.1 * jax.random.normal(kb, (Cout,), dtype=jnp.float32)

    out = shortcut_forward(x, conv_weight, bn_gamma, bn_beta)
    out = jax.block_until_ready(out)

    ref = shortcut_reference(x, conv_weight, bn_gamma, bn_beta)
    assert out.shape == (N, Cout, H // 2, W // 2), out.shape
    # bf16 MXU inputs vs f32 reference -> ~1e-2 worst-case element error.
    max_err = float(jnp.max(jnp.abs(out - ref)))
    assert jnp.allclose(out, ref, atol=3e-2, rtol=3e-2), max_err

    print("KERNEL_OK")
</pallas_src>

<mosaic_0001>
module attributes {stable_mosaic.version = 11 : i64} {
  func.func @stats_kernel(%arg0: i32, %arg1: memref<128x128xbf16, #tpu.memory_space<vmem>>, %arg2: memref<128x128xbf16, #tpu.memory_space<vmem>>, %arg3: memref<1x128xf32, #tpu.memory_space<vmem>>, %arg4: memref<1x128xf32, #tpu.memory_space<vmem>>, %arg5: memref<1x128xf32, #tpu.memory_space<vmem>>, %arg6: memref<1x128xf32, #tpu.memory_space<vmem>>, %arg7: memref<1x128xf32, #tpu.memory_space<vmem>>, %arg8: memref<1x128xf32, #tpu.memory_space<vmem>>) attributes {dimension_semantics = [#tpu.dimension_semantics<arbitrary>], iteration_bounds = array<i64: 1>, scalar_prefetch = 0 : i64, scratch_operands = 2 : i64, tpu.core_type = #tpu.core_type<tc>, window_params = [{transform_indices = @transform_0, window_bounds = array<i64: 128, 128>}, {pipeline_mode = #tpu.pipeline_mode<synchronous>, transform_indices = @transform_1, window_bounds = array<i64: 128, 128>}, {pipeline_mode = #tpu.pipeline_mode<synchronous>, transform_indices = @transform_2, window_bounds = array<i64: 1, 128>}, {pipeline_mode = #tpu.pipeline_mode<synchronous>, transform_indices = @transform_3, window_bounds = array<i64: 1, 128>}, {pipeline_mode = #tpu.pipeline_mode<synchronous>, transform_indices = @transform_4, window_bounds = array<i64: 1, 128>}, {pipeline_mode = #tpu.pipeline_mode<synchronous>, transform_indices = @transform_5, window_bounds = array<i64: 1, 128>}]} {
    %c0_i32 = arith.constant 0 : i32
    %0 = arith.cmpi eq, %arg0, %c0_i32 : i32
    %1 = arith.extui %0 : i1 to i32
    %c0_i32_0 = arith.constant 0 : i32
    %2 = arith.cmpi ne, %1, %c0_i32_0 : i32
    scf.if %2 {
      %cst_16 = arith.constant 0.000000e+00 : f32
      %20 = vector.broadcast %cst_16 : f32 to vector<1x128xf32>
      %c0_17 = arith.constant 0 : index
      %c0_18 = arith.constant 0 : index
      %21 = vector.load %arg7[%c0_17, %c0_18] : memref<1x128xf32, #tpu.memory_space<vmem>>, vector<1x128xf32>
      tpu.vector_store %arg7[%c0_17, %c0_18], %20 {strides = array<i32>} : memref<1x128xf32, #tpu.memory_space<vmem>>, vector<1x128xf32>,
      %cst_19 = arith.constant 0.000000e+00 : f32
      %22 = vector.broadcast %cst_19 : f32 to vector<1x128xf32>
      %c0_20 = arith.constant 0 : index
      %c0_21 = arith.constant 0 : index
      %23 = vector.load %arg8[%c0_20, %c0_21] : memref<1x128xf32, #tpu.memory_space<vmem>>, vector<1x128xf32>
      tpu.vector_store %arg8[%c0_20, %c0_21], %22 {strides = array<i32>} : memref<1x128xf32, #tpu.memory_space<vmem>>, vector<1x128xf32>,
    } else {
    }
    %c0 = arith.constant 0 : index
    %c0_1 = arith.constant 0 : index
    %3 = vector.load %arg1[%c0, %c0_1] : memref<128x128xbf16, #tpu.memory_space<vmem>>, vector<128x128xbf16>
    %c0_2 = arith.constant 0 : index
    %c0_3 = arith.constant 0 : index
    %4 = vector.load %arg2[%c0_2, %c0_3] : memref<128x128xbf16, #tpu.memory_space<vmem>>, vector<128x128xbf16>
    %cst = arith.constant dense<0.000000e+00> : vector<128x128xf32>
    %5 = tpu.matmul %3, %4, %cst {dimension_numbers = #tpu.dot_dimension_numbers<[1], [0], [0], [1], [0, 0, 1, 1], [], []>} : vector<128x128xbf16>, vector<128x128xbf16>, vector<128x128xf32> -> vector<128x128xf32>
    %c0_4 = arith.constant 0 : index
    %c0_5 = arith.constant 0 : index
    %6 = vector.load %arg7[%c0_4, %c0_5] : memref<1x128xf32, #tpu.memory_space<vmem>>, vector<1x128xf32>
    %cst_6 = arith.constant dense<0.000000e+00> : vector<128xf32>
    %7 = vector.multi_reduction <add>, %5, %cst_6 [0] : vector<128x128xf32> to vector<128xf32>
    %8 = vector.shape_cast %7 : vector<128xf32> to vector<1x128xf32>
    %9 = arith.addf %6, %8 : vector<1x128xf32>
    %c0_7 = arith.constant 0 : index
    %c0_8 = arith.constant 0 : index
    %10 = vector.load %arg7[%c0_7, %c0_8] : memref<1x128xf32, #tpu.memory_space<vmem>>, vector<1x128xf32>
    tpu.vector_store %arg7[%c0_7, %c0_8], %9 {strides = array<i32>} : memref<1x128xf32, #tpu.memory_space<vmem>>, vector<1x128xf32>,
    %c0_9 = arith.constant 0 : index
    %c0_10 = arith.constant 0 : index
    %11 = vector.load %arg8[%c0_9, %c0_10] : memref<1x128xf32, #tpu.memory_space<vmem>>, vector<1x128xf32>
    %12 = arith.mulf %5, %5 : vector<128x128xf32>
    %cst_11 = arith.constant dense<0.000000e+00> : vector<128xf32>
    %13 = vector.multi_reduction <add>, %12, %cst_11 [0] : vector<128x128xf32> to vector<128xf32>
    %14 = vector.shape_cast %13 : vector<128xf32> to vector<1x128xf32>
    %15 = arith.addf %11, %14 : vector<1x128xf32>
    %c0_12 = arith.constant 0 : index
    %c0_13 = arith.constant 0 : index
    %16 = vector.load %arg8[%c0_12, %c0_13] : memref<1x128xf32, #tpu.memory_space<vmem>>, vector<1x128xf32>
    tpu.vector_store %arg8[%c0_12, %c0_13], %15 {strides = array<i32>} : memref<1x128xf32, #tpu.memory_space<vmem>>, vector<1x128xf32>,
    %c0_i32_14 = arith.constant 0 : i32
    %17 = arith.cmpi eq, %arg0, %c0_i32_14 : i32
    %18 = arith.extui %17 : i1 to i32
    %c0_i32_15 = arith.constant 0 : i32
    %19 = arith.cmpi ne, %18, %c0_i32_15 : i32
    scf.if %19 {
      %c0_16 = arith.constant 0 : index
      %c0_17 = arith.constant 0 : index
      %20 = vector.load %arg7[%c0_16, %c0_17] : memref<1x128xf32, #tpu.memory_space<vmem>>, vector<1x128xf32>
      %cst_18 = arith.constant 7.812500e-03 : f32
      %21 = vector.broadcast %cst_18 : f32 to vector<1x128xf32>
      %22 = arith.mulf %20, %21 : vector<1x128xf32>
      %c0_19 = arith.constant 0 : index
      %c0_20 = arith.constant 0 : index
      %23 = vector.load %arg8[%c0_19, %c0_20] : memref<1x128xf32, #tpu.memory_space<vmem>>, vector<1x128xf32>
      %cst_21 = arith.constant 7.812500e-03 : f32
      %24 = vector.broadcast %cst_21 : f32 to vector<1x128xf32>
      %25 = arith.mulf %23, %24 : vector<1x128xf32>
      %26 = arith.mulf %22, %22 : vector<1x128xf32>
      %27 = arith.subf %25, %26 : vector<1x128xf32>
      %cst_22 = arith.constant 0.000000e+00 : f32
      %28 = vector.broadcast %cst_22 : f32 to vector<1x128xf32>
      %29 = arith.maximumf %27, %28 : vector<1x128xf32>
      %cst_23 = arith.constant 9.99999974E-6 : f32
      %30 = vector.broadcast %cst_23 : f32 to vector<1x128xf32>
      %31 = arith.addf %29, %30 : vector<1x128xf32>
      %32 = math.rsqrt %31 : vector<1x128xf32>
      %c0_24 = arith.constant 0 : index
      %c0_25 = arith.constant 0 : index
      %33 = vector.load %arg3[%c0_24, %c0_25] : memref<1x128xf32, #tpu.memory_space<vmem>>, vector<1x128xf32>
      %34 = arith.mulf %33, %32 : vector<1x128xf32>
      %c0_26 = arith.constant 0 : index
      %c0_27 = arith.constant 0 : index
      %35 = vector.load %arg5[%c0_26, %c0_27] : memref<1x128xf32, #tpu.memory_space<vmem>>, vector<1x128xf32>
      tpu.vector_store %arg5[%c0_26, %c0_27], %34 {strides = array<i32>} : memref<1x128xf32, #tpu.memory_space<vmem>>, vector<1x128xf32>,
      %c0_28 = arith.constant 0 : index
      %c0_29 = arith.constant 0 : index
      %36 = vector.load %arg4[%c0_28, %c0_29] : memref<1x128xf32, #tpu.memory_space<vmem>>, vector<1x128xf32>
      %37 = arith.mulf %22, %34 : vector<1x128xf32>
      %38 = arith.subf %36, %37 : vector<1x128xf32>
      %c0_30 = arith.constant 0 : index
      %c0_31 = arith.constant 0 : index
      %39 = vector.load %arg6[%c0_30, %c0_31] : memref<1x128xf32, #tpu.memory_space<vmem>>, vector<1x128xf32>
      tpu.vector_store %arg6[%c0_30, %c0_31], %38 {strides = array<i32>} : memref<1x128xf32, #tpu.memory_space<vmem>>, vector<1x128xf32>,
    } else {
    }
    return
  }
  func.func @transform_0(%arg0: i32) -> (i32, i32) {
    %c0_i32 = arith.constant 0 : i32
    %c0_i32_0 = arith.constant 0 : i32
    return %arg0, %c0_i32 : i32, i32
  }
  func.func @transform_1(%arg0: i32) -> (i32, i32) {
    %c0_i32 = arith.constant 0 : i32
    %c0_i32_0 = arith.constant 0 : i32
    %c0_i32_1 = arith.constant 0 : i32
    return %c0_i32, %c0_i32_0 : i32, i32
  }
  func.func @transform_2(%arg0: i32) -> (i32, i32) {
    %c0_i32 = arith.constant 0 : i32
    %c0_i32_0 = arith.constant 0 : i32
    %c0_i32_1 = arith.constant 0 : i32
    return %c0_i32, %c0_i32_0 : i32, i32
  }
  func.func @transform_3(%arg0: i32) -> (i32, i32) {
    %c0_i32 = arith.constant 0 : i32
    %c0_i32_0 = arith.constant 0 : i32
    %c0_i32_1 = arith.constant 0 : i32
    return %c0_i32, %c0_i32_0 : i32, i32
  }
  func.func @transform_4(%arg0: i32) -> (i32, i32) {
    %c0_i32 = arith.constant 0 : i32
    %c0_i32_0 = arith.constant 0 : i32
    %c0_i32_1 = arith.constant 0 : i32
    return %c0_i32, %c0_i32_0 : i32, i32
  }
  func.func @transform_5(%arg0: i32) -> (i32, i32) {
    %c0_i32 = arith.constant 0 : i32
    %c0_i32_0 = arith.constant 0 : i32
    %c0_i32_1 = arith.constant 0 : i32
    return %c0_i32, %c0_i32_0 : i32, i32
  }
}

</mosaic_0001>

<bundles_post_ra>
// kernel: tpu_custom_call.1
= control target key start
LH: loop header
LB: loop body
LE: loop exit
PB: predicated region body
PF: predicated region fallthrough
CT: control target
= control target key end

     0   :  { %11 = vsyncpa [#allocation5], 0  ;;  %s634_s0 = inlined_call_operand.hbm [shape: bf16[128,128], index: 0, kind: input, shape index: {}]   ;;  %s635_s1 = inlined_call_operand.hbm [shape: bf16[128,128], index: 1, kind: input, shape index: {}]   ;;  %s636_s2 = inlined_call_operand.vmem [shape: f32[1,128], index: 2, kind: input, shape index: {}]   ;;  %s637_s3 = inlined_call_operand.vmem [shape: f32[1,128], index: 3, kind: input, shape index: {}]   ;;  %s638_s4 = inlined_call_operand.hbm [shape: f32[1,128], index: 4, kind: output, shape index: {0}]   ;;  %s639_s5 = inlined_call_operand.hbm [shape: f32[1,128], index: 5, kind: output, shape index: {1}]  }
   0x1   :  { %12 = vsyncpa [#allocation8], 0 }
   0x2   :  { %13 = vsyncpa [#allocation6], 0 }
   0x3   :  { %14 = vsyncpa [#allocation11], 0  ;;  %s19_s20 = sshll.u32 %s634_s0, 4  ;;  %s579_s21 = smov [#allocation4]   ;;  %s20_s20 = int_to_ptr.hbm [resolvable:$true] %s19_s20 }
   0x4   :  { %s21_s22 = sshll.u32 %s579_s21, 4  ;;  %s32_s25 = sshll.u32 %s635_s1, 4  ;;  %s22_s22 = int_to_ptr.vmem [resolvable:$true] %s21_s22  ;;  %s33_s25 = int_to_ptr.hbm [resolvable:$true] %s32_s25 }
   0x5   :  { %s580_s26 = smov 64   ;;  %s581_s27 = smov 4  }
   0x6   :  { %27 = dma.hbm_to_vmem [thread:$0]  %s20_s20, 1024, %s22_s22, [#allocation5], %s580_s26, %s580_s26, %s581_s27  }
   0x7   :  { %s582_s28 = smov [#allocation7]  }
   0x8   :  { %s34_s29 = sshll.u32 %s582_s28, 4  ;;  %s35_s29 = int_to_ptr.vmem [resolvable:$true] %s34_s29 }
   0x9   :  { %40 = dma.hbm_to_vmem [thread:$0]  %s33_s25, 1024, %s35_s29, [#allocation8], %s580_s26, %s580_s26, %s581_s27  }
   0xa   :  { %571 = dma.done.wait [#allocation5], 1024  }
   0xb   :  { %572 = vsyncadd [#allocation5], 4294966272 }
   0xc   :  { %573 = dma.done.wait [#allocation8], 1024  }
   0xd   :  { %574 = vsyncadd [#allocation8], 4294966272  ;;  %v441_v0 = vld [vmem:[#allocation7 + $0x38] sm:$0xff]  ;;  %v440_v1 = vld [vmem:[#allocation7 + $0x30] sm:$0xff]  ;;  %v583_v24 = vmov 0.0   ;;  %s584_s30 = smov [#allocation9]  }
   0xe   :  { %187 = vmatpush.bf16.msra.mxu0 %v441_v0  ;;  %442 = vmatpush.bf16.msra.mxu1 %v441_v0  ;;  %v439_v2 = vld [vmem:[#allocation7 + $0x28] sm:$0xff]  ;;  %v438_v3 = vld [vmem:[#allocation7 + $0x20] sm:$0xff]  ;;  %v437_v4 = vld [vmem:[#allocation7 + $0x18] sm:$0xff]  ;;  %57 = vst [vmem:[#allocation2] sm:$0x1] %v583_v24  ;;  %s333_s6 = sshll.u32 %s584_s30, 4  ;;  %s334_s6 = int_to_ptr.vmem [resolvable:$true] %s333_s6 }
   0xf   :  { %443 = vmatpush.bf16.msra.mxu2 %v441_v0  ;;  %444 = vmatpush.bf16.msra.mxu3 %v441_v0  ;;  %v436_v5 = vld [vmem:[#allocation7 + $0x10] sm:$0xff]  ;;  %v435_v6 = vld [vmem:[#allocation7 + $0x8] sm:$0xff]  ;;  %v434_v7 = vld [vmem:[#allocation7] sm:$0xff]  ;;  %58 = vst [vmem:[#allocation3] sm:$0x1] %v583_v24  ;;  %s335_s9 = sshll.u32 %s638_s4, 4  ;;  %s336_s9 = int_to_ptr.hbm [resolvable:$true] %s335_s9 }
  0x10   :  { %v426_v8 = vld [vmem:[#allocation4] sm:$0xff]  ;;  %v428_v9 = vld [vmem:[#allocation4 + $0x10] sm:$0xff]  ;;  %v427_v12 = vld [vmem:[#allocation4 + $0x8] sm:$0xff]  ;;  %s585_s12 = smov [#allocation10]  }
  0x11   :  { %v430_v10 = vld [vmem:[#allocation4 + $0x20] sm:$0xff]  ;;  %v432_v11 = vld [vmem:[#allocation4 + $0x30] sm:$0xff]  ;;  %v429_v13 = vld [vmem:[#allocation4 + $0x18] sm:$0xff]  ;;  %s344_s13 = sshll.u32 %s585_s12, 4  ;;  %s345_s13 = int_to_ptr.vmem [resolvable:$true] %s344_s13 }
  0x12   :  { %188 = vmatpush.bf16.msra.mxu0 %v440_v1  ;;  %445 = vmatpush.bf16.msra.mxu1 %v440_v1  ;;  %v431_v14 = vld [vmem:[#allocation4 + $0x28] sm:$0xff]  ;;  %v433_v15 = vld [vmem:[#allocation4 + $0x38] sm:$0xff] }
  0x13   :  { %446 = vmatpush.bf16.msra.mxu2 %v440_v1  ;;  %447 = vmatpush.bf16.msra.mxu3 %v440_v1 }
  0x15   :  { %v236_v24 = vld [vmem:[#allocation2] sm:$0x1] }
  0x16   :  { %189 = vmatpush.bf16.msra.mxu0 %v439_v2  ;;  %448 = vmatpush.bf16.msra.mxu1 %v439_v2 }
  0x17   :  { %449 = vmatpush.bf16.msra.mxu2 %v439_v2  ;;  %450 = vmatpush.bf16.msra.mxu3 %v439_v2 }
  0x1a   :  { %190 = vmatpush.bf16.msra.mxu0 %v438_v3  ;;  %451 = vmatpush.bf16.msra.mxu1 %v438_v3 }
  0x1b   :  { %452 = vmatpush.bf16.msra.mxu2 %v438_v3  ;;  %453 = vmatpush.bf16.msra.mxu3 %v438_v3 }
  0x1e   :  { %191 = vmatpush.bf16.msra.mxu0 %v437_v4  ;;  %454 = vmatpush.bf16.msra.mxu1 %v437_v4 }
  0x1f   :  { %455 = vmatpush.bf16.msra.mxu2 %v437_v4  ;;  %456 = vmatpush.bf16.msra.mxu3 %v437_v4 }
  0x22   :  { %192 = vmatpush.bf16.msra.mxu0 %v436_v5  ;;  %457 = vmatpush.bf16.msra.mxu1 %v436_v5 }
  0x23   :  { %458 = vmatpush.bf16.msra.mxu2 %v436_v5  ;;  %459 = vmatpush.bf16.msra.mxu3 %v436_v5 }
  0x26   :  { %193 = vmatpush.bf16.msra.mxu0 %v435_v6  ;;  %460 = vmatpush.bf16.msra.mxu1 %v435_v6 }
  0x27   :  { %461 = vmatpush.bf16.msra.mxu2 %v435_v6  ;;  %462 = vmatpush.bf16.msra.mxu3 %v435_v6 }
  0x2a   :  { %194 = vmatpush.bf16.msra.mxu0 %v434_v7  ;;  %463 = vmatpush.bf16.msra.mxu1 %v434_v7 }
  0x2b   :  { %464 = vmatpush.bf16.msra.mxu2 %v434_v7  ;;  %465 = vmatpush.bf16.msra.mxu3 %v434_v7 }
  0x2d   :  { %195 = vmatmul.bf16.vlgmr.msra.gmra.mxu0 %v426_v8  ;;  %205 = vmatmul.bf16.vlgmr.msra.gmra.mxu1 %v428_v9 }
  0x2e   :  { %215 = vmatmul.bf16.vlgmr.msra.gmra.mxu2 %v430_v10  ;;  %225 = vmatmul.bf16.vlgmr.msra.gmra.mxu3 %v432_v11 }
  0x3d   :  { %200 = vmatmul.bf16.gmra.mxu0 %v427_v12  ;;  %210 = vmatmul.bf16.gmra.mxu1 %v429_v13 }
  0x3e   :  { %220 = vmatmul.bf16.gmra.mxu2 %v431_v14  ;;  %230 = vmatmul.bf16.gmra.mxu3 %v433_v15 }
  0xaa   :  { %v196_v16 = vpop.f32.mrf.mxu0  ;;  %v206_v17 = vpop.f32.mrf.mxu1 }
  0xab   :  { %v261_v27 = vmul.f32 %v196_v16, %v196_v16  ;;  %v265_v37 = vmul.f32 %v206_v17, %v206_v17 }
  0xb1   :  { %v216_v19 = vpop.f32.mrf.mxu2  ;;  %v226_v22 = vpop.f32.mrf.mxu3 }
  0xb2   :  { %v198_v18 = vpop.f32.mrf.mxu0  ;;  %v208_v20 = vpop.f32.mrf.mxu1  ;;  %v269_v51 = vmul.f32 %v216_v19, %v216_v19  ;;  %v273_v1 = vmul.f32 %v226_v22, %v226_v22 }
  0xb3   :  { %v262_v25 = vmul.f32 %v198_v18, %v198_v18  ;;  %v237_v28 = vadd.f32 %v198_v18, %v196_v16  ;;  %v266_v41 = vmul.f32 %v208_v20, %v208_v20 }
  0xb5   :  { %v277_v30 = vadd.f32 %v262_v25, %v261_v27  ;;  %v260_v27 = vld [vmem:[#allocation3] sm:$0x1] }
  0xb9   :  { %v218_v23 = vpop.f32.mrf.mxu2  ;;  %v228_v36 = vpop.f32.mrf.mxu3 }
  0xba   :  { %v201_v21 = vpop.f32.mrf.mxu0  ;;  %v211_v26 = vpop.f32.mrf.mxu1  ;;  %v270_v55 = vmul.f32 %v218_v23, %v218_v23  ;;  %v274_v4 = vmul.f32 %v228_v36, %v228_v36 }
  0xbb   :  { %v263_v29 = vmul.f32 %v201_v21, %v201_v21  ;;  %v238_v31 = vadd.f32 %v237_v28, %v201_v21  ;;  %v267_v45 = vmul.f32 %v211_v26, %v211_v26 }
  0xbd   :  { %v278_v33 = vadd.f32 %v277_v30, %v263_v29 }
  0xc1   :  { %v221_v40 = vpop.f32.mrf.mxu2  ;;  %v231_v54 = vpop.f32.mrf.mxu3 }
  0xc2   :  { %v203_v32 = vpop.f32.mrf.mxu0  ;;  %v213_v44 = vpop.f32.mrf.mxu1  ;;  %v271_v60 = vmul.f32 %v221_v40, %v221_v40  ;;  %v275_v9 = vmul.f32 %v231_v54, %v231_v54 }
  0xc3   :  { %v239_v34 = vadd.f32 %v238_v31, %v203_v32  ;;  %v264_v35 = vmul.f32 %v203_v32, %v203_v32  ;;  %v268_v49 = vmul.f32 %v213_v44, %v213_v44 }
  0xc5   :  { %v240_v38 = vadd.f32 %v239_v34, %v206_v17  ;;  %v279_v39 = vadd.f32 %v278_v33, %v264_v35 }
  0xc7   :  { %v280_v42 = vadd.f32 %v279_v39, %v265_v37  ;;  %v241_v43 = vadd.f32 %v240_v38, %v208_v20 }
  0xc9   :  { %v242_v46 = vadd.f32 %v241_v43, %v211_v26  ;;  %v281_v47 = vadd.f32 %v280_v42, %v266_v41  ;;  %v223_v58 = vpop.f32.mrf.mxu2  ;;  %v233_v7 = vpop.f32.mrf.mxu3 }
  0xca   :  { %v272_v0 = vmul.f32 %v223_v58, %v223_v58  ;;  %v276_v13 = vmul.f32 %v233_v7, %v233_v7 }
  0xcb   :  { %v243_v48 = vadd.f32 %v242_v46, %v213_v44  ;;  %v282_v50 = vadd.f32 %v281_v47, %v267_v45  ;;  %v321_v45 = vld [vmem:[%s636_s2] sm:$0x1]  ;;  %s346_s2 = sshll.u32 %s639_s5, 4  ;;  %s347_s2 = int_to_ptr.hbm [resolvable:$true] %s346_s2 }
  0xcd   :  { %v244_v52 = vadd.f32 %v243_v48, %v216_v19  ;;  %v283_v53 = vadd.f32 %v282_v50, %v268_v49  ;;  %v324_v48 = vld [vmem:[%s637_s3] sm:$0x1] }
  0xcf   :  { %v284_v56 = vadd.f32 %v283_v53, %v269_v51  ;;  %v245_v57 = vadd.f32 %v244_v52, %v218_v23 }
  0xd1   :  { %v246_v59 = vadd.f32 %v245_v57, %v221_v40  ;;  %v285_v61 = vadd.f32 %v284_v56, %v270_v55 }
  0xd3   :  { %v286_v62 = vadd.f32 %v285_v61, %v271_v60  ;;  %v247_v63 = vadd.f32 %v246_v59, %v223_v58 }
  0xd5   :  { %v248_v2 = vadd.f32 %v247_v63, %v226_v22  ;;  %v287_v3 = vadd.f32 %v286_v62, %v272_v0 }
  0xd7   :  { %v288_v5 = vadd.f32 %v287_v3, %v273_v1  ;;  %v249_v6 = vadd.f32 %v248_v2, %v228_v36 }
  0xd9   :  { %v250_v8 = vadd.f32 %v249_v6, %v231_v54  ;;  %v289_v10 = vadd.f32 %v288_v5, %v274_v4 }
  0xdb   :  { %v290_v11 = vadd.f32 %v289_v10, %v275_v9  ;;  %v251_v12 = vadd.f32 %v250_v8, %v233_v7 }
  0xdd   :  { %v252_v14 = vrot.slane %v251_v12, 4  ;;  %v291_v15 = vadd.f32 %v290_v11, %v276_v13 }
  0xdf   :  { %v253_v16 = vadd.f32 %v252_v14, %v251_v12  ;;  %v292_v17 = vrot.slane %v291_v15, 4 }
  0xe1   :  { %v254_v18 = vrot.slane %v253_v16, 2  ;;  %v293_v19 = vadd.f32 %v292_v17, %v291_v15 }
  0xe3   :  { %v255_v20 = vadd.f32 %v254_v18, %v253_v16  ;;  %v294_v21 = vrot.slane %v293_v19, 2 }
  0xe5   :  { %v256_v22 = vrot.slane %v255_v20, 1  ;;  %v295_v23 = vadd.f32 %v294_v21, %v293_v19 }
  0xe7   :  { %v257_v25 = vadd.f32 %v256_v22, %v255_v20  ;;  %v296_v26 = vrot.slane %v295_v23, 1 }
  0xe9   :  { %v258_v28 = vadd.f32 %v257_v25, %v236_v24  ;;  %v297_v29 = vadd.f32 %v296_v26, %v295_v23 }
  0xeb   :  { %259 = vst [vmem:[#allocation2] sm:$0x1] %v258_v28  ;;  %v298_v30 = vadd.f32 %v297_v29, %v260_v27 }
  0xed   :  { %299 = vst [vmem:[#allocation3] sm:$0x1] %v298_v30 }
  0xf2   :  { %v303_v31 = vld [vmem:[#allocation2] sm:$0x1] }
  0xf3   :  { %v304_v32 = vmul.f32 0.0078125, %v303_v31 }
  0xf4   :  { %v305_v33 = vld [vmem:[#allocation3] sm:$0x1] }
  0xf5   :  { %v306_v34 = vmul.f32 0.0078125, %v305_v33  ;;  %v307_v35 = vmul.f32 %v304_v32, %v304_v32 }
  0xf7   :  { %v308_v36 = vsub.f32 %v306_v34, %v307_v35 }
  0xf9   :  { %v309_v37 = vmax.f32 %v308_v36, 0.0 }
  0xfb   :  { %v310_v38 = vadd.f32 1e-05, %v309_v37 }
  0xfd   :  { %473 = vrsqrt.f32 %v310_v38  ;;  %vm317_vm1 = vweird.f32 %v310_v38 }
 0x103   :  { %v474_v39 = vpop.eup %473 }
 0x104   :  { %v312_v40 = vmul.f32 %v474_v39, %v310_v38  ;;  %vm318_vm0 = vweird.f32 %v474_v39 }
 0x105   :  { %vm319_vm2 = vmor %vm317_vm1, %vm318_vm0 }
 0x106   :  { %v313_v41 = vmul.f32 %v474_v39, %v312_v40 }
 0x108   :  { %v314_v42 = vmul.f32 0.5, %v313_v41 }
 0x10a   :  { %v315_v43 = vsub.f32 1.5, %v314_v42 }
 0x10c   :  { %v316_v44 = vmul.f32 %v474_v39, %v315_v43 }
 0x10e   :  { %v320_v46 = vsel %vm319_vm2, %v474_v39, %v316_v44 }
 0x10f   :  { %v322_v47 = vmul.f32 %v321_v45, %v320_v46 }
 0x111   :  { %323 = vst [vmem:[#allocation9] sm:$0x1] %v322_v47  ;;  %v325_v49 = vmul.f32 %v322_v47, %v304_v32 }
 0x112   :  { %338 = dma.vmem_to_hbm [thread:$0]  %s334_s6, 16, %s336_s9, [#allocation6]  }
 0x113   :  { %v326_v50 = vsub.f32 %v324_v48, %v325_v49 }
 0x115   :  { %327 = vst [vmem:[#allocation10] sm:$0x1] %v326_v50 }
 0x116   :  { %349 = dma.vmem_to_hbm [thread:$0]  %s345_s13, 16, %s347_s2, [#allocation11]  }
 0x117   :  { %575 = dma.done.wait [#allocation6], 16  }
 0x118   :  { %576 = vsyncadd [#allocation6], 4294967280 }
 0x119   :  { %577 = dma.done.wait [#allocation11], 16  }
 0x11a   :  { %578 = vsyncadd [#allocation11], 4294967280 }
 0x11b   :  { %358 = vsyncpa [#allocation5], 1 }
 0x11c   :  { %359 = vsyncpa [#allocation8], 1 }
 0x11d   :  { %360 = vsyncpa [#allocation6], 1 }
 0x11e   :  { %361 = vsyncpa [#allocation11], 1 }

</bundles_post_ra>
